<compile_context>
chip_gen: v5e
topology: v5e:2x2
jax: 0.10.0
libtpu: 0.0.40
codegen_flags: <defaults>
</compile_context>

<pallas_src>
import functools

import jax
import jax.numpy as jnp
from jax.experimental import pallas as pl
from jax.experimental.pallas import tpu as pltpu


def _round_up(x: int, m: int) -> int:
    return ((x + m - 1) // m) * m


# ----------------------------------------------------------------------------
# Fused Pallas kernel: all Linear(+ReLU) layers in one body, batch-tiled.
# ----------------------------------------------------------------------------
def _mlp_fused_kernel(x_ref, *refs, relu_flags, compute_dtype):
    # refs = (w0, b0, w1, b1, ..., w_{L-1}, b_{L-1}, o_ref)
    o_ref = refs[-1]
    wb_refs = refs[:-1]
    n_layers = len(relu_flags)

    h = x_ref[...]                                    # (tm, F_pad) compute_dtype
    for i in range(n_layers):
        w = wb_refs[2 * i][...]                       # (K_i, N_i) compute_dtype
        b = wb_refs[2 * i + 1][...]                   # (1, N_i)   float32
        acc = jnp.dot(h, w, preferred_element_type=jnp.float32) + b
        if relu_flags[i]:
            acc = jnp.maximum(acc, 0.0)
        if i + 1 < n_layers:
            # Carry inter-layer activation in compute dtype (ReLU+cast fused,
            # halves live vreg/VMEM bytes). Stays in vregs/VMEM, never HBM.
            h = acc.astype(compute_dtype)
        else:
            h = acc
    o_ref[...] = h.astype(o_ref.dtype)


# ----------------------------------------------------------------------------
# Wrapper: padding, tiling, BlockSpecs, VMEM budget, cost estimate.
# ----------------------------------------------------------------------------
def mlpfeat_forward(x, weights, biases, *, nonlinear_embedding: bool,
                    tm: int = 512, compute_dtype=jnp.bfloat16):
    """Equivalent of MLPfeat.forward. x: any shape with leading batch dim.

    compute_dtype=jnp.float32 is a validated exact-precision fallback.
    """
    B = x.shape[0]
    h = x.reshape(B, -1)                              # == x.view(B, input_size)
    F = h.shape[1]
    n_layers = len(weights)
    n_last = weights[-1].shape[1]
    relu_flags = tuple([True] * (n_layers - 1) + [bool(nonlinear_embedding)])

    itemsize = jnp.dtype(compute_dtype).itemsize
    sub = 16 if itemsize == 2 else 8                  # bf16 sublane packing

    # --- Pad every matmul dim (F and all hidden widths) to a multiple of 128.
    #     Exact: padded output cols are 0 (zero weight col + zero bias, ReLU
    #     keeps 0) and padded K rows of the next layer are zero.
    dims = [F] + [w.shape[1] for w in weights]
    pdims = [_round_up(d, 128) for d in dims]
    F_pad, n_pad = pdims[0], pdims[-1]

    ws, bs = [], []
    for i, (w, b) in enumerate(zip(weights, biases)):
        k0, n0 = w.shape
        kp, np_ = pdims[i], pdims[i + 1]
        ws.append(jnp.pad(w.astype(compute_dtype), ((0, kp - k0), (0, np_ - n0))))
        bs.append(jnp.pad(b.astype(jnp.float32).reshape(1, -1),
                          ((0, 0), (0, np_ - n0))))

    # --- Activation streamed in compute dtype; pad F and the batch.
    h = h.astype(compute_dtype)
    if F_pad != F:
        h = jnp.pad(h, ((0, 0), (0, F_pad - F)))

    tm = _round_up(max(sub, min(tm, _round_up(B, sub))), sub)
    if B > tm:
        # >= 2 balanced grid steps so the "parallel" axis spans both v7x TCs.
        tm = min(tm, _round_up(-(-B // 2), sub))
    b_pad = _round_up(B, tm)
    if b_pad != B:
        h = jnp.pad(h, ((0, b_pad - B), (0, 0)))
    grid = (b_pad // tm,)

    # --- VMEM budget: resident weights/biases (worst case double-buffered),
    #     double-buffered activation input + output tiles, inter-layer scratch.
    wb_bytes = (sum(w.size * itemsize for w in ws) + sum(b.size * 4 for b in bs))
    act_bytes = 2 * tm * F_pad * itemsize
    out_bytes = 2 * tm * n_pad * 4
    mid_bytes = 2 * tm * max(pdims[1:]) * 4
    needed = 2 * wb_bytes + act_bytes + out_bytes + mid_bytes
    try:
        phys_vmem = pltpu.get_tpu_info().vmem_capacity_bytes
    except Exception:
        phys_vmem = 64 << 20                          # v7x per-TC floor
    vmem_limit = int(min(max(2 * needed, 32 << 20), phys_vmem * 7 // 8))

    # --- Advisory cost estimate for XLA scheduling.
    flops = int(sum(2 * b_pad * w.shape[0] * w.shape[1] for w in ws))
    bytes_accessed = int(h.size * itemsize
                         + sum(w.size * itemsize for w in ws)
                         + sum(b.size * 4 for b in bs)
                         + b_pad * n_pad * 4)

    kernel = functools.partial(_mlp_fused_kernel,
                               relu_flags=relu_flags,
                               compute_dtype=compute_dtype)

    args = [h]
    for w, b in zip(ws, bs):
        args.append(w)
        args.append(b)

    def build(single_buffer_weights: bool):
        in_specs = [pl.BlockSpec((tm, F_pad), lambda i: (i, 0))]  # activation
        for w, b in zip(ws, bs):
            k_in, n_out = w.shape
            if single_buffer_weights:
                # Grid-invariant: single-buffer to halve resident weight VMEM.
                w_spec = pl.BlockSpec((k_in, n_out), lambda i: (0, 0),
                                      pipeline_mode=pl.Buffered(1))
                b_spec = pl.BlockSpec((1, n_out), lambda i: (0, 0),
                                      pipeline_mode=pl.Buffered(1))
            else:
                w_spec = pl.BlockSpec((k_in, n_out), lambda i: (0, 0))
                b_spec = pl.BlockSpec((1, n_out), lambda i: (0, 0))
            in_specs.append(w_spec)
            in_specs.append(b_spec)
        out_specs = pl.BlockSpec((tm, n_pad), lambda i: (i, 0))
        return pl.pallas_call(
            kernel,
            out_shape=jax.ShapeDtypeStruct((b_pad, n_pad), jnp.float32),
            grid_spec=pltpu.PrefetchScalarGridSpec(
                num_scalar_prefetch=0,
                grid=grid,
                in_specs=in_specs,
                out_specs=out_specs,
            ),
            compiler_params=pltpu.CompilerParams(
                dimension_semantics=("parallel",),
                vmem_limit_bytes=vmem_limit,
            ),
            cost_estimate=pl.CostEstimate(
                flops=flops, transcendentals=0, bytes_accessed=bytes_accessed),
        )

    try:
        out = jax.block_until_ready(build(True)(*args))
    except Exception:
        # pipeline_mode=pl.Buffered(1) not supported by this jax/libtpu combo;
        # fall back to default double-buffered (still VMEM-resident) weights.
        out = build(False)(*args)

    return out[:B, :n_last]


# ----------------------------------------------------------------------------
# Parameter init mimicking nn.Linear default (uniform +/- 1/sqrt(fan_in)).
# ----------------------------------------------------------------------------
def init_mlpfeat_params(key, input_size, hidden_sizes):
    weights, biases = [], []
    fan_ins = [input_size] + list(hidden_sizes[:-1])
    for fan_in, fan_out in zip(fan_ins, hidden_sizes):
        key, kw, kb = jax.random.split(key, 3)
        bound = 1.0 / jnp.sqrt(jnp.float32(fan_in))
        w = jax.random.uniform(kw, (fan_in, fan_out), jnp.float32, -bound, bound)
        b = jax.random.uniform(kb, (fan_out,), jnp.float32, -bound, bound)
        weights.append(w)
        biases.append(b)
    return weights, biases


# ----------------------------------------------------------------------------
# Reference (plain JAX) mirroring the kernel's dtype handling.
# ----------------------------------------------------------------------------
def mlpfeat_ref(x, weights, biases, *, nonlinear_embedding: bool,
                compute_dtype=jnp.bfloat16):
    B = x.shape[0]
    h = x.reshape(B, -1).astype(jnp.float32)
    n_layers = len(weights)
    for i, (w, b) in enumerate(zip(weights, biases)):
        h = jnp.dot(h.astype(compute_dtype), w.astype(compute_dtype),
                    preferred_element_type=jnp.float32) + b
        if (i < n_layers - 1) or nonlinear_embedding:
            h = jnp.maximum(h, 0.0)
    return h


if __name__ == "__main__":
    # Small shapes consistent with the module:
    #   input image 1x16x16 -> input_size = 256
    #   nb_layers = 2, hidden_sizes = (200, 72) (exercises the 128-padding),
    #   nonlinear_embedding = True
    key = jax.random.PRNGKey(0)
    B, C, H, W = 8, 1, 16, 16
    input_size = C * H * W
    hidden_sizes = (200, 72)
    nonlinear_embedding = True

    key, kx = jax.random.split(key)
    x = jax.random.normal(kx, (B, C, H, W), jnp.float32)  # NCHW

    weights, biases = init_mlpfeat_params(key, input_size, hidden_sizes)

    # bf16 MXU path vs dtype-matched reference.
    out = jax.block_until_ready(
        mlpfeat_forward(x, weights, biases,
                        nonlinear_embedding=nonlinear_embedding))
    ref = mlpfeat_ref(x, weights, biases,
                      nonlinear_embedding=nonlinear_embedding)
    assert out.shape == (B, hidden_sizes[-1])
    assert jnp.allclose(out, ref, atol=1e-2, rtol=1e-2)

    # Full-precision (f32) fallback vs exact f32 reference.
    out_f32 = jax.block_until_ready(
        mlpfeat_forward(x, weights, biases,
                        nonlinear_embedding=nonlinear_embedding,
                        compute_dtype=jnp.float32))
    ref_f32 = mlpfeat_ref(x, weights, biases,
                          nonlinear_embedding=nonlinear_embedding,
                          compute_dtype=jnp.float32)
    assert jnp.allclose(out_f32, ref_f32, atol=1e-5, rtol=1e-5)

    # Non-multiple-of-16 batch padding path.
    x6 = x[:6]
    out6 = jax.block_until_ready(
        mlpfeat_forward(x6, weights, biases,
                        nonlinear_embedding=nonlinear_embedding))
    ref6 = mlpfeat_ref(x6, weights, biases,
                       nonlinear_embedding=nonlinear_embedding)
    assert out6.shape == (6, hidden_sizes[-1])
    assert jnp.allclose(out6, ref6, atol=1e-2, rtol=1e-2)

    # Batch larger than one tile: forces >= 2 grid steps (megacore split path).
    key, kx2 = jax.random.split(key)
    xb = jax.random.normal(kx2, (40, C, H, W), jnp.float32)
    outb = jax.block_until_ready(
        mlpfeat_forward(xb, weights, biases,
                        nonlinear_embedding=nonlinear_embedding, tm=32))
    refb = mlpfeat_ref(xb, weights, biases,
                       nonlinear_embedding=nonlinear_embedding)
    assert outb.shape == (40, hidden_sizes[-1])
    assert jnp.allclose(outb, refb, atol=1e-2, rtol=1e-2)

    print("KERNEL_OK")
</pallas_src>

<mosaic_0001>
module attributes {stable_mosaic.version = 11 : i64} {
  func.func @_mlp_fused_kernel(%arg0: i32, %arg1: memref<16x256xbf16, #tpu.memory_space<vmem>>, %arg2: memref<256x256xbf16, #tpu.memory_space<vmem>>, %arg3: memref<1x256xf32, #tpu.memory_space<vmem>>, %arg4: memref<256x128xbf16, #tpu.memory_space<vmem>>, %arg5: memref<1x128xf32, #tpu.memory_space<vmem>>, %arg6: memref<16x128xf32, #tpu.memory_space<vmem>>) attributes {dimension_semantics = [#tpu.dimension_semantics<parallel>], iteration_bounds = array<i64: 1>, scalar_prefetch = 0 : i64, scratch_operands = 0 : i64, tpu.core_type = #tpu.core_type<tc>, window_params = [{transform_indices = @transform_0, window_bounds = array<i64: 16, 256>}, {pipeline_mode = #tpu.pipeline_mode<synchronous>, transform_indices = @transform_1, window_bounds = array<i64: 256, 256>}, {pipeline_mode = #tpu.pipeline_mode<synchronous>, transform_indices = @transform_2, window_bounds = array<i64: 1, 256>}, {pipeline_mode = #tpu.pipeline_mode<synchronous>, transform_indices = @transform_3, window_bounds = array<i64: 256, 128>}, {pipeline_mode = #tpu.pipeline_mode<synchronous>, transform_indices = @transform_4, window_bounds = array<i64: 1, 128>}, {transform_indices = @transform_5, window_bounds = array<i64: 16, 128>}]} {
    %c0 = arith.constant 0 : index
    %c0_0 = arith.constant 0 : index
    %0 = vector.load %arg1[%c0, %c0_0] : memref<16x256xbf16, #tpu.memory_space<vmem>>, vector<16x256xbf16>
    %c0_1 = arith.constant 0 : index
    %c0_2 = arith.constant 0 : index
    %1 = vector.load %arg2[%c0_1, %c0_2] : memref<256x256xbf16, #tpu.memory_space<vmem>>, vector<256x256xbf16>
    %c0_3 = arith.constant 0 : index
    %c0_4 = arith.constant 0 : index
    %2 = vector.load %arg3[%c0_3, %c0_4] : memref<1x256xf32, #tpu.memory_space<vmem>>, vector<1x256xf32>
    %cst = arith.constant dense<0.000000e+00> : vector<16x256xf32>
    %3 = tpu.matmul %0, %1, %cst {dimension_numbers = #tpu.dot_dimension_numbers<[1], [0], [0], [1], [0, 0, 1, 1], [], []>} : vector<16x256xbf16>, vector<256x256xbf16>, vector<16x256xf32> -> vector<16x256xf32>
    %4 = vector.broadcast %2 : vector<1x256xf32> to vector<16x256xf32>
    %5 = arith.addf %3, %4 : vector<16x256xf32>
    %cst_5 = arith.constant 0.000000e+00 : f32
    %6 = vector.broadcast %cst_5 : f32 to vector<16x256xf32>
    %7 = arith.maximumf %5, %6 : vector<16x256xf32>
    %8 = arith.truncf %7 : vector<16x256xf32> to vector<16x256xbf16>
    %c0_6 = arith.constant 0 : index
    %c0_7 = arith.constant 0 : index
    %9 = vector.load %arg4[%c0_6, %c0_7] : memref<256x128xbf16, #tpu.memory_space<vmem>>, vector<256x128xbf16>
    %c0_8 = arith.constant 0 : index
    %c0_9 = arith.constant 0 : index
    %10 = vector.load %arg5[%c0_8, %c0_9] : memref<1x128xf32, #tpu.memory_space<vmem>>, vector<1x128xf32>
    %cst_10 = arith.constant dense<0.000000e+00> : vector<16x128xf32>
    %11 = tpu.matmul %8, %9, %cst_10 {dimension_numbers = #tpu.dot_dimension_numbers<[1], [0], [0], [1], [0, 0, 1, 1], [], []>} : vector<16x256xbf16>, vector<256x128xbf16>, vector<16x128xf32> -> vector<16x128xf32>
    %12 = vector.broadcast %10 : vector<1x128xf32> to vector<16x128xf32>
    %13 = arith.addf %11, %12 : vector<16x128xf32>
    %cst_11 = arith.constant 0.000000e+00 : f32
    %14 = vector.broadcast %cst_11 : f32 to vector<16x128xf32>
    %15 = arith.maximumf %13, %14 : vector<16x128xf32>
    %c0_12 = arith.constant 0 : index
    %c0_13 = arith.constant 0 : index
    %16 = vector.load %arg6[%c0_12, %c0_13] : memref<16x128xf32, #tpu.memory_space<vmem>>, vector<16x128xf32>
    tpu.vector_store %arg6[%c0_12, %c0_13], %15 {strides = array<i32>} : memref<16x128xf32, #tpu.memory_space<vmem>>, vector<16x128xf32>,
    return
  }
  func.func @transform_0(%arg0: i32) -> (i32, i32) {
    %c0_i32 = arith.constant 0 : i32
    %c0_i32_0 = arith.constant 0 : i32
    return %arg0, %c0_i32 : i32, i32
  }
  func.func @transform_1(%arg0: i32) -> (i32, i32) {
    %c0_i32 = arith.constant 0 : i32
    %c0_i32_0 = arith.constant 0 : i32
    %c0_i32_1 = arith.constant 0 : i32
    return %c0_i32, %c0_i32_0 : i32, i32
  }
  func.func @transform_2(%arg0: i32) -> (i32, i32) {
    %c0_i32 = arith.constant 0 : i32
    %c0_i32_0 = arith.constant 0 : i32
    %c0_i32_1 = arith.constant 0 : i32
    return %c0_i32, %c0_i32_0 : i32, i32
  }
  func.func @transform_3(%arg0: i32) -> (i32, i32) {
    %c0_i32 = arith.constant 0 : i32
    %c0_i32_0 = arith.constant 0 : i32
    %c0_i32_1 = arith.constant 0 : i32
    return %c0_i32, %c0_i32_0 : i32, i32
  }
  func.func @transform_4(%arg0: i32) -> (i32, i32) {
    %c0_i32 = arith.constant 0 : i32
    %c0_i32_0 = arith.constant 0 : i32
    %c0_i32_1 = arith.constant 0 : i32
    return %c0_i32, %c0_i32_0 : i32, i32
  }
  func.func @transform_5(%arg0: i32) -> (i32, i32) {
    %c0_i32 = arith.constant 0 : i32
    %c0_i32_0 = arith.constant 0 : i32
    return %arg0, %c0_i32 : i32, i32
  }
}

module attributes {stable_mosaic.version = 11 : i64} {
  func.func @_mlp_fused_kernel(%arg0: i32, %arg1: memref<16x256xbf16, #tpu.memory_space<vmem>>, %arg2: memref<256x256xbf16, #tpu.memory_space<vmem>>, %arg3: memref<1x256xf32, #tpu.memory_space<vmem>>, %arg4: memref<256x128xbf16, #tpu.memory_space<vmem>>, %arg5: memref<1x128xf32, #tpu.memory_space<vmem>>, %arg6: memref<16x128xf32, #tpu.memory_space<vmem>>) attributes {dimension_semantics = [#tpu.dimension_semantics<parallel>], iteration_bounds = array<i64: 1>, scalar_prefetch = 0 : i64, scratch_operands = 0 : i64, tpu.core_type = #tpu.core_type<tc>, window_params = [{transform_indices = @transform_0, window_bounds = array<i64: 16, 256>}, {pipeline_mode = #tpu.pipeline_mode<synchronous>, transform_indices = @transform_1, window_bounds = array<i64: 256, 256>}, {pipeline_mode = #tpu.pipeline_mode<synchronous>, transform_indices = @transform_2, window_bounds = array<i64: 1, 256>}, {pipeline_mode = #tpu.pipeline_mode<synchronous>, transform_indices = @transform_3, window_bounds = array<i64: 256, 128>}, {pipeline_mode = #tpu.pipeline_mode<synchronous>, transform_indices = @transform_4, window_bounds = array<i64: 1, 128>}, {transform_indices = @transform_5, window_bounds = array<i64: 16, 128>}]} {
    %c0 = arith.constant 0 : index
    %c0_0 = arith.constant 0 : index
    %0 = vector.load %arg1[%c0, %c0_0] : memref<16x256xbf16, #tpu.memory_space<vmem>>, vector<16x256xbf16>
    %c0_1 = arith.constant 0 : index
    %c0_2 = arith.constant 0 : index
    %1 = vector.load %arg2[%c0_1, %c0_2] : memref<256x256xbf16, #tpu.memory_space<vmem>>, vector<256x256xbf16>
    %c0_3 = arith.constant 0 : index
    %c0_4 = arith.constant 0 : index
    %2 = vector.load %arg3[%c0_3, %c0_4] : memref<1x256xf32, #tpu.memory_space<vmem>>, vector<1x256xf32>
    %cst = arith.constant dense<0.000000e+00> : vector<16x256xf32>
    %3 = tpu.matmul %0, %1, %cst {dimension_numbers = #tpu.dot_dimension_numbers<[1], [0], [0], [1], [0, 0, 1, 1], [], []>} : vector<16x256xbf16>, vector<256x256xbf16>, vector<16x256xf32> -> vector<16x256xf32>
    %4 = vector.broadcast %2 : vector<1x256xf32> to vector<16x256xf32>
    %5 = arith.addf %3, %4 : vector<16x256xf32>
    %cst_5 = arith.constant 0.000000e+00 : f32
    %6 = vector.broadcast %cst_5 : f32 to vector<16x256xf32>
    %7 = arith.maximumf %5, %6 : vector<16x256xf32>
    %8 = arith.truncf %7 : vector<16x256xf32> to vector<16x256xbf16>
    %c0_6 = arith.constant 0 : index
    %c0_7 = arith.constant 0 : index
    %9 = vector.load %arg4[%c0_6, %c0_7] : memref<256x128xbf16, #tpu.memory_space<vmem>>, vector<256x128xbf16>
    %c0_8 = arith.constant 0 : index
    %c0_9 = arith.constant 0 : index
    %10 = vector.load %arg5[%c0_8, %c0_9] : memref<1x128xf32, #tpu.memory_space<vmem>>, vector<1x128xf32>
    %cst_10 = arith.constant dense<0.000000e+00> : vector<16x128xf32>
    %11 = tpu.matmul %8, %9, %cst_10 {dimension_numbers = #tpu.dot_dimension_numbers<[1], [0], [0], [1], [0, 0, 1, 1], [], []>} : vector<16x256xbf16>, vector<256x128xbf16>, vector<16x128xf32> -> vector<16x128xf32>
    %12 = vector.broadcast %10 : vector<1x128xf32> to vector<16x128xf32>
    %13 = arith.addf %11, %12 : vector<16x128xf32>
    %cst_11 = arith.constant 0.000000e+00 : f32
    %14 = vector.broadcast %cst_11 : f32 to vector<16x128xf32>
    %15 = arith.maximumf %13, %14 : vector<16x128xf32>
    %c0_12 = arith.constant 0 : index
    %c0_13 = arith.constant 0 : index
    %16 = vector.load %arg6[%c0_12, %c0_13] : memref<16x128xf32, #tpu.memory_space<vmem>>, vector<16x128xf32>
    tpu.vector_store %arg6[%c0_12, %c0_13], %15 {strides = array<i32>} : memref<16x128xf32, #tpu.memory_space<vmem>>, vector<16x128xf32>,
    return
  }
  func.func @transform_0(%arg0: i32) -> (i32, i32) {
    %c0_i32 = arith.constant 0 : i32
    %c0_i32_0 = arith.constant 0 : i32
    return %arg0, %c0_i32 : i32, i32
  }
  func.func @transform_1(%arg0: i32) -> (i32, i32) {
    %c0_i32 = arith.constant 0 : i32
    %c0_i32_0 = arith.constant 0 : i32
    %c0_i32_1 = arith.constant 0 : i32
    return %c0_i32, %c0_i32_0 : i32, i32
  }
  func.func @transform_2(%arg0: i32) -> (i32, i32) {
    %c0_i32 = arith.constant 0 : i32
    %c0_i32_0 = arith.constant 0 : i32
    %c0_i32_1 = arith.constant 0 : i32
    return %c0_i32, %c0_i32_0 : i32, i32
  }
  func.func @transform_3(%arg0: i32) -> (i32, i32) {
    %c0_i32 = arith.constant 0 : i32
    %c0_i32_0 = arith.constant 0 : i32
    %c0_i32_1 = arith.constant 0 : i32
    return %c0_i32, %c0_i32_0 : i32, i32
  }
  func.func @transform_4(%arg0: i32) -> (i32, i32) {
    %c0_i32 = arith.constant 0 : i32
    %c0_i32_0 = arith.constant 0 : i32
    %c0_i32_1 = arith.constant 0 : i32
    return %c0_i32, %c0_i32_0 : i32, i32
  }
  func.func @transform_5(%arg0: i32) -> (i32, i32) {
    %c0_i32 = arith.constant 0 : i32
    %c0_i32_0 = arith.constant 0 : i32
    return %arg0, %c0_i32 : i32, i32
  }
}

</mosaic_0001>

<bundles_post_ra>
// kernel: tpu_custom_call.1
= control target key start
LH: loop header
LB: loop body
LE: loop exit
PB: predicated region body
PF: predicated region fallthrough
CT: control target
= control target key end

     0   :  { %10 = vsyncpa [#allocation3], 0  ;;  %s993_s0 = inlined_call_operand.hbm [shape: bf16[16,256], index: 0, kind: input, shape index: {}]   ;;  %s994_s1 = inlined_call_operand.hbm [shape: bf16[256,256], index: 1, kind: input, shape index: {}]   ;;  %s995_s2 = inlined_call_operand.hbm [shape: f32[1,256], index: 2, kind: input, shape index: {}]   ;;  %s996_s3 = inlined_call_operand.hbm [shape: bf16[256,128], index: 3, kind: input, shape index: {}]   ;;  %s997_s4 = inlined_call_operand.vmem [shape: f32[1,128], index: 4, kind: input, shape index: {}]   ;;  %s998_s5 = inlined_call_operand.hbm [shape: f32[16,128], index: 5, kind: output, shape index: {}]  }
   0x1   :  { %11 = vsyncpa [#allocation6], 0 }
   0x2   :  { %12 = vsyncpa [#allocation9], 0 }
   0x3   :  { %13 = vsyncpa [#allocation4], 0  ;;  %s31_s20 = sshll.u32 %s994_s1, 4  ;;  %s927_s21 = smov [#allocation5]   ;;  %s32_s20 = int_to_ptr.hbm [resolvable:$true] %s31_s20 }
   0x4   :  { %s33_s22 = sshll.u32 %s927_s21, 4  ;;  %s18_s25 = sshll.u32 %s993_s0, 4  ;;  %s34_s22 = int_to_ptr.vmem [resolvable:$true] %s33_s22  ;;  %s19_s25 = int_to_ptr.hbm [resolvable:$true] %s18_s25 }
   0x5   :  { %s928_s26 = smov 128   ;;  %s929_s27 = smov 8  }
   0x6   :  { %39 = dma.hbm_to_vmem [thread:$0]  %s32_s20, 4096, %s34_s22, [#allocation6], %s928_s26, %s928_s26, %s929_s27  }
   0x7   :  { %s930_s28 = smov [#allocation2]   ;;  %s45_s1 = sshll.u32 %s995_s2, 4  ;;  %s46_s1 = int_to_ptr.hbm [resolvable:$true] %s45_s1 }
   0x8   :  { %s20_s29 = sshll.u32 %s930_s28, 4  ;;  %s55_s8 = sshll.u32 %s996_s3, 4  ;;  %s21_s29 = int_to_ptr.vmem [resolvable:$true] %s20_s29  ;;  %s56_s8 = int_to_ptr.hbm [resolvable:$true] %s55_s8 }
   0x9   :  { %26 = dma.hbm_to_vmem [thread:$0]  %s19_s25, 256, %s21_s29, [#allocation3], %s928_s26, %s928_s26, %s929_s27  }
   0xa   :  { %s931_s9 = smov [#allocation7]   ;;  %s932_s11 = smov [#allocation8]  }
   0xb   :  { %s47_s10 = sshll.u32 %s931_s9, 4  ;;  %s57_s12 = sshll.u32 %s932_s11, 4  ;;  %s48_s10 = int_to_ptr.vmem [resolvable:$true] %s47_s10  ;;  %s58_s12 = int_to_ptr.vmem [resolvable:$true] %s57_s12 }
   0xc   :  { %50 = dma.hbm_to_vmem [thread:$0]  %s46_s1, 32, %s48_s10, [#allocation6]  }
   0xd   :  { %s933_s13 = smov 64   ;;  %s934_s2 = smov 4  }
   0xe   :  { %63 = dma.hbm_to_vmem [thread:$0]  %s56_s8, 2048, %s58_s12, [#allocation9], %s933_s13, %s933_s13, %s934_s2  }
   0xf   :  { %919 = dma.done.wait [#allocation3], 256  }
  0x10   :  { %920 = vsyncadd [#allocation3], 4294967040 }
  0x11   :  { %921 = dma.done.wait [#allocation6], 4128  }
  0x12   :  { %922 = vsyncadd [#allocation6], 4294963168 }
  0x13   :  { %923 = dma.done.wait [#allocation9], 2048  }
  0x14   :  { %924 = vsyncadd [#allocation9], 4294965248  ;;  %v605_v0 = vld [vmem:[#allocation5 + $0x70] sm:$0xf]  ;;  %v756_v1 = vld [vmem:[#allocation5 + $0x74] sm:$0xf0] }
  0x15   :  { %v669_v2 = vld [vmem:[#allocation5 + $0xf0] sm:$0xf]  ;;  %v606_v3 = vor.u32 %v756_v1, %v605_v0  ;;  %v772_v4 = vld [vmem:[#allocation5 + $0xf4] sm:$0xf0]  ;;  %v755_v5 = vld [vmem:[#allocation5 + $0x74] sm:$0xf] }
  0x16   :  { %v607_v6 = vld [vmem:[#allocation5 + $0x78] sm:$0xf0]  ;;  %v670_v7 = vor.u32 %v772_v4, %v669_v2  ;;  %v771_v9 = vld [vmem:[#allocation5 + $0xf4] sm:$0xf]  ;;  %v597_v11 = vld [vmem:[#allocation5 + $0x60] sm:$0xf] }
  0x17   :  { %v610_v8 = vor.u32 %v755_v5, %v607_v6  ;;  %v671_v10 = vld [vmem:[#allocation5 + $0xf8] sm:$0xf0]  ;;  %292 = vmatpush.bf16.msra.mxu0 %v606_v3  ;;  %v754_v13 = vld [vmem:[#allocation5 + $0x64] sm:$0xf0]  ;;  %v661_v14 = vld [vmem:[#allocation5 + $0xe0] sm:$0xf] }
  0x18   :  { %v674_v12 = vor.u32 %v771_v9, %v671_v10  ;;  %v770_v15 = vld [vmem:[#allocation5 + $0xe4] sm:$0xf0]  ;;  %306 = vmatpush.bf16.msra.mxu1 %v670_v7  ;;  %v598_v16 = vor.u32 %v754_v13, %v597_v11  ;;  %v753_v18 = vld [vmem:[#allocation5 + $0x64] sm:$0xf]  ;;  %v599_v19 = vld [vmem:[#allocation5 + $0x68] sm:$0xf0] }
  0x19   :  { %320 = vmatpush.bf16.msra.mxu2 %v610_v8  ;;  %v662_v17 = vor.u32 %v770_v15, %v661_v14  ;;  %v769_v20 = vld [vmem:[#allocation5 + $0xe4] sm:$0xf]  ;;  %v602_v21 = vor.u32 %v753_v18, %v599_v19  ;;  %v663_v22 = vld [vmem:[#allocation5 + $0xe8] sm:$0xf0]  ;;  %v589_v23 = vld [vmem:[#allocation5 + $0x50] sm:$0xf] }
  0x1a   :  { %334 = vmatpush.bf16.msra.mxu3 %v674_v12  ;;  %v752_v24 = vld [vmem:[#allocation5 + $0x54] sm:$0xf0]  ;;  %v666_v25 = vor.u32 %v769_v20, %v663_v22  ;;  %v653_v26 = vld [vmem:[#allocation5 + $0xd0] sm:$0xf]  ;;  %v751_v28 = vld [vmem:[#allocation5 + $0x54] sm:$0xf] }
  0x1b   :  { %v768_v27 = vld [vmem:[#allocation5 + $0xd4] sm:$0xf0]  ;;  %293 = vmatpush.bf16.msra.mxu0 %v598_v16  ;;  %v590_v29 = vor.u32 %v752_v24, %v589_v23  ;;  %v591_v30 = vld [vmem:[#allocation5 + $0x58] sm:$0xf0]  ;;  %v767_v31 = vld [vmem:[#allocation5 + $0xd4] sm:$0xf] }
  0x1c   :  { %v655_v32 = vld [vmem:[#allocation5 + $0xd8] sm:$0xf0]  ;;  %307 = vmatpush.bf16.msra.mxu1 %v662_v17  ;;  %v654_v33 = vor.u32 %v768_v27, %v653_v26  ;;  %v594_v34 = vor.u32 %v751_v28, %v591_v30  ;;  %v581_v35 = vld [vmem:[#allocation5 + $0x40] sm:$0xf]  ;;  %v750_v36 = vld [vmem:[#allocation5 + $0x44] sm:$0xf0] }
  0x1d   :  { %321 = vmatpush.bf16.msra.mxu2 %v602_v21  ;;  %v645_v37 = vld [vmem:[#allocation5 + $0xc0] sm:$0xf]  ;;  %v658_v38 = vor.u32 %v767_v31, %v655_v32  ;;  %v766_v39 = vld [vmem:[#allocation5 + $0xc4] sm:$0xf0]  ;;  %v749_v40 = vld [vmem:[#allocation5 + $0x44] sm:$0xf]  ;;  %v582_v44 = vor.u32 %v750_v36, %v581_v35 }
  0x1e   :  { %335 = vmatpush.bf16.msra.mxu3 %v666_v25  ;;  %v583_v41 = vld [vmem:[#allocation5 + $0x48] sm:$0xf0]  ;;  %v765_v42 = vld [vmem:[#allocation5 + $0xc4] sm:$0xf]  ;;  %v646_v45 = vor.u32 %v766_v39, %v645_v37  ;;  %v573_v47 = vld [vmem:[#allocation5 + $0x30] sm:$0xf] }
  0x1f   :  { %v647_v43 = vld [vmem:[#allocation5 + $0xc8] sm:$0xf0]  ;;  %294 = vmatpush.bf16.msra.mxu0 %v590_v29  ;;  %v586_v46 = vor.u32 %v749_v40, %v583_v41  ;;  %v748_v48 = vld [vmem:[#allocation5 + $0x34] sm:$0xf0]  ;;  %v637_v49 = vld [vmem:[#allocation5 + $0xb0] sm:$0xf] }
  0x20   :  { %308 = vmatpush.bf16.msra.mxu1 %v654_v33  ;;  %v650_v50 = vor.u32 %v765_v42, %v647_v43  ;;  %v764_v51 = vld [vmem:[#allocation5 + $0xb4] sm:$0xf0]  ;;  %v747_v52 = vld [vmem:[#allocation5 + $0x34] sm:$0xf]  ;;  %v575_v53 = vld [vmem:[#allocation5 + $0x38] sm:$0xf0]  ;;  %v574_v56 = vor.u32 %v748_v48, %v573_v47 }
  0x21   :  { %322 = vmatpush.bf16.msra.mxu2 %v594_v34  ;;  %v763_v54 = vld [vmem:[#allocation5 + $0xb4] sm:$0xf]  ;;  %v639_v55 = vld [vmem:[#allocation5 + $0xb8] sm:$0xf0]  ;;  %v638_v57 = vor.u32 %v764_v51, %v637_v49  ;;  %v578_v58 = vor.u32 %v747_v52, %v575_v53  ;;  %v565_v59 = vld [vmem:[#allocation5 + $0x20] sm:$0xf] }
  0x22   :  { %336 = vmatpush.bf16.msra.mxu3 %v658_v38  ;;  %v746_v60 = vld [vmem:[#allocation5 + $0x24] sm:$0xf0]  ;;  %v629_v61 = vld [vmem:[#allocation5 + $0xa0] sm:$0xf]  ;;  %v642_v62 = vor.u32 %v763_v54, %v639_v55  ;;  %v745_v0 = vld [vmem:[#allocation5 + $0x24] sm:$0xf] }
  0x23   :  { %295 = vmatpush.bf16.msra.mxu0 %v582_v44  ;;  %v762_v63 = vld [vmem:[#allocation5 + $0xa4] sm:$0xf0]  ;;  %v567_v1 = vld [vmem:[#allocation5 + $0x28] sm:$0xf0]  ;;  %v761_v2 = vld [vmem:[#allocation5 + $0xa4] sm:$0xf]  ;;  %v566_v4 = vor.u32 %v746_v60, %v565_v59 }
  0x24   :  { %309 = vmatpush.bf16.msra.mxu1 %v646_v45  ;;  %v631_v3 = vld [vmem:[#allocation5 + $0xa8] sm:$0xf0]  ;;  %v630_v5 = vor.u32 %v762_v63, %v629_v61  ;;  %v570_v6 = vor.u32 %v745_v0, %v567_v1  ;;  %v557_v7 = vld [vmem:[#allocation5 + $0x10] sm:$0xf]  ;;  %v744_v8 = vld [vmem:[#allocation5 + $0x14] sm:$0xf0] }
  0x25   :  { %323 = vmatpush.bf16.msra.mxu2 %v586_v46  ;;  %v621_v9 = vld [vmem:[#allocation5 + $0x90] sm:$0xf]  ;;  %v634_v10 = vor.u32 %v761_v2, %v631_v3  ;;  %v760_v11 = vld [vmem:[#allocation5 + $0x94] sm:$0xf0]  ;;  %v743_v12 = vld [vmem:[#allocation5 + $0x14] sm:$0xf]  ;;  %v558_v16 = vor.u32 %v744_v8, %v557_v7 }
  0x26   :  { %337 = vmatpush.bf16.msra.mxu3 %v650_v50  ;;  %v559_v13 = vld [vmem:[#allocation5 + $0x18] sm:$0xf0]  ;;  %v759_v14 = vld [vmem:[#allocation5 + $0x94] sm:$0xf]  ;;  %v549_v17 = vld [vmem:[#allocation5] sm:$0xf]  ;;  %v622_v18 = vor.u32 %v760_v11, %v621_v9 }
  0x27   :  { %296 = vmatpush.bf16.msra.mxu0 %v574_v56  ;;  %v623_v15 = vld [vmem:[#allocation5 + $0x98] sm:$0xf0]  ;;  %v562_v19 = vor.u32 %v743_v12, %v559_v13  ;;  %v742_v20 = vld [vmem:[#allocation5 + $0x4] sm:$0xf0]  ;;  %v613_v21 = vld [vmem:[#allocation5 + $0x80] sm:$0xf] }
  0x28   :  { %310 = vmatpush.bf16.msra.mxu1 %v638_v57  ;;  %v758_v22 = vld [vmem:[#allocation5 + $0x84] sm:$0xf0]  ;;  %v626_v23 = vor.u32 %v759_v14, %v623_v15  ;;  %v741_v24 = vld [vmem:[#allocation5 + $0x4] sm:$0xf]  ;;  %v551_v25 = vld [vmem:[#allocation5 + $0x8] sm:$0xf0]  ;;  %v550_v28 = vor.u32 %v742_v20, %v549_v17 }
  0x29   :  { %324 = vmatpush.bf16.msra.mxu2 %v578_v58  ;;  %v757_v26 = vld [vmem:[#allocation5 + $0x84] sm:$0xf]  ;;  %v615_v27 = vld [vmem:[#allocation5 + $0x88] sm:$0xf0]  ;;  %v541_v29 = vld [vmem:[#allocation2] sm:$0xf]  ;;  %v614_v31 = vor.u32 %v758_v22, %v613_v21  ;;  %v554_v32 = vor.u32 %v741_v24, %v551_v25 }
  0x2a   :  { %338 = vmatpush.bf16.msra.mxu3 %v642_v62  ;;  %v740_v30 = vld [vmem:[#allocation2 + $0x4] sm:$0xf0]  ;;  %v739_v33 = vld [vmem:[#allocation2 + $0x4] sm:$0xf]  ;;  %v543_v34 = vld [vmem:[#allocation2 + $0x8] sm:$0xf0]  ;;  %v618_v35 = vor.u32 %v757_v26, %v615_v27 }
  0x2b   :  { %297 = vmatpush.bf16.msra.mxu0 %v566_v4  ;;  %v780_v36 = vld [vmem:[#allocation8 + $0x38] sm:$0xff]  ;;  %v542_v37 = vor.u32 %v740_v30, %v541_v29  ;;  %v546_v39 = vor.u32 %v739_v33, %v543_v34  ;;  %v779_v40 = vld [vmem:[#allocation8 + $0x30] sm:$0xff]  ;;  %v778_v42 = vld [vmem:[#allocation8 + $0x28] sm:$0xff]  ;;  %s935_s15 = smov [#allocation10]   ;;  %s524_s19 = sshll.u32 %s998_s5, 4  ;;  %s525_s19 = int_to_ptr.hbm [resolvable:$true] %s524_s19 }
  0x2c   :  { %311 = vmatpush.bf16.msra.mxu1 %v630_v5  ;;  %v788_v38 = vld [vmem:[#allocation8 + $0x78] sm:$0xff]  ;;  %v787_v41 = vld [vmem:[#allocation8 + $0x70] sm:$0xff]  ;;  %v777_v43 = vld [vmem:[#allocation8 + $0x20] sm:$0xff]  ;;  %s522_s16 = sshll.u32 %s935_s15, 4  ;;  %s523_s16 = int_to_ptr.vmem [resolvable:$true] %s522_s16 }
  0x2d   :  { %325 = vmatpush.bf16.msra.mxu2 %v570_v6  ;;  %v786_v44 = vld [vmem:[#allocation8 + $0x68] sm:$0xff]  ;;  %v776_v45 = vld [vmem:[#allocation8 + $0x18] sm:$0xff]  ;;  %v785_v46 = vld [vmem:[#allocation8 + $0x60] sm:$0xff] }
  0x2e   :  { %339 = vmatpush.bf16.msra.mxu3 %v634_v10  ;;  %v775_v47 = vld [vmem:[#allocation8 + $0x10] sm:$0xff]  ;;  %v784_v48 = vld [vmem:[#allocation8 + $0x58] sm:$0xff]  ;;  %v774_v49 = vld [vmem:[#allocation8 + $0x8] sm:$0xff] }
  0x2f   :  { %298 = vmatpush.bf16.msra.mxu0 %v558_v16  ;;  %v783_v50 = vld [vmem:[#allocation8 + $0x50] sm:$0xff]  ;;  %v773_v51 = vld [vmem:[#allocation8] sm:$0xff]  ;;  %v782_v52 = vld [vmem:[#allocation8 + $0x48] sm:$0xff] }
  0x30   :  { %312 = vmatpush.bf16.msra.mxu1 %v622_v18  ;;  %v781_v53 = vld [vmem:[#allocation8 + $0x40] sm:$0xff]  ;;  %v116_v54 = vld [vmem:[#allocation7] sm:$0x3]  ;;  %v798_v16 = vld [vmem:[%s997_s4] ss:$0 sm:$0xff] }
  0x31   :  { %326 = vmatpush.bf16.msra.mxu2 %v562_v19  ;;  %v118_v56 = vperm.slane %v116_v54, 0  ;;  %v119_v60 = vperm.slane %v116_v54, 1 }
  0x32   :  { %340 = vmatpush.bf16.msra.mxu3 %v626_v23 }
  0x33   :  { %299 = vmatpush.bf16.msra.mxu0 %v550_v28 }
  0x34   :  { %313 = vmatpush.bf16.msra.mxu1 %v614_v31 }
  0x35   :  { %327 = vmatpush.bf16.msra.mxu2 %v554_v32 }
  0x36   :  { %341 = vmatpush.bf16.msra.mxu3 %v618_v35  ;;  %300 = vmatmul.bf16.vlgmr.msra.gmra.mxu0 %v542_v37 }
  0x37   :  { %486 = vmatpush.bf16.msrb.mxu0 %v780_v36  ;;  %314 = vmatmul.bf16.vlgmr.msra.gmra.mxu1 %v546_v39 }
  0x38   :  { %500 = vmatpush.bf16.msrb.mxu1 %v788_v38  ;;  %328 = vmatmul.bf16.vlgmr.msra.gmra.mxu2 %v542_v37 }
  0x39   :  { %342 = vmatmul.bf16.vlgmr.msra.gmra.mxu3 %v546_v39 }
  0x3b   :  { %487 = vmatpush.bf16.msrb.mxu0 %v779_v40 }
  0x3c   :  { %501 = vmatpush.bf16.msrb.mxu1 %v787_v41 }
  0x3f   :  { %488 = vmatpush.bf16.msrb.mxu0 %v778_v42 }
  0x40   :  { %502 = vmatpush.bf16.msrb.mxu1 %v786_v44 }
  0x43   :  { %489 = vmatpush.bf16.msrb.mxu0 %v777_v43 }
  0x44   :  { %503 = vmatpush.bf16.msrb.mxu1 %v785_v46 }
  0x47   :  { %490 = vmatpush.bf16.msrb.mxu0 %v776_v45 }
  0x48   :  { %504 = vmatpush.bf16.msrb.mxu1 %v784_v48 }
  0x4b   :  { %491 = vmatpush.bf16.msrb.mxu0 %v775_v47 }
  0x4c   :  { %505 = vmatpush.bf16.msrb.mxu1 %v783_v50 }
  0x4f   :  { %492 = vmatpush.bf16.msrb.mxu0 %v774_v49 }
  0x50   :  { %506 = vmatpush.bf16.msrb.mxu1 %v782_v52 }
  0x53   :  { %493 = vmatpush.bf16.msrb.mxu0 %v773_v51 }
  0x54   :  { %507 = vmatpush.bf16.msrb.mxu1 %v781_v53 }
  0xb3   :  { %v301_v55 = vpop.f32.mrf.mxu0 }
  0xb4   :  { %v315_v57 = vpop.f32.mrf.mxu1  ;;  %v302_v58 = vadd.f32 %v301_v55, %v118_v56 }
  0xb6   :  { %v316_v63 = vadd.f32 %v315_v57, %v302_v58 }
  0xb8   :  { %v348_v4 = vmax.f32 %v316_v63, 0.0 }
  0xbb   :  { %v329_v59 = vpop.f32.mrf.mxu2  ;;  %v303_v62 = vpop.f32.mrf.mxu0 }
  0xbc   :  { %v343_v61 = vpop.f32.mrf.mxu3  ;;  %v304_v0 = vadd.f32 %v303_v62, %v118_v56  ;;  %v317_v1 = vpop.f32.mrf.mxu1  ;;  %v330_v3 = vadd.f32 %v329_v59, %v119_v60 }
  0xbe   :  { %v318_v2 = vadd.f32 %v317_v1, %v304_v0  ;;  %v344_v8 = vadd.f32 %v343_v61, %v330_v3 }
  0xc0   :  { %v350_v5 = vmax.f32 %v318_v2, 0.0  ;;  %v349_v12 = vmax.f32 %v344_v8, 0.0 }
  0xc2   :  { %v352_v6 = vpack.c.bf16 %v350_v5, %v348_v4 }
  0xc3   :  { %v331_v7 = vpop.f32.mrf.mxu2 }
  0xc4   :  { %v332_v9 = vadd.f32 %v331_v7, %v119_v60  ;;  %v345_v10 = vpop.f32.mrf.mxu3  ;;  %494 = vmatmul.bf16.vlgmr.msrb.gmra.mxu0 %v352_v6 }
  0xc6   :  { %v346_v11 = vadd.f32 %v345_v10, %v332_v9 }
  0xc8   :  { %v351_v13 = vmax.f32 %v346_v11, 0.0 }
  0xca   :  { %v353_v14 = vpack.c.bf16 %v351_v13, %v349_v12 }
  0xcc   :  { %508 = vmatmul.bf16.vlgmr.msrb.gmra.mxu1 %v353_v14 }
 0x141   :  { %v495_v15 = vpop.f32.mrf.mxu0 }
 0x142   :  { %v496_v17 = vadd.f32 %v798_v16, %v495_v15 }
 0x149   :  { %v509_v18 = vpop.f32.mrf.mxu1  ;;  %v497_v21 = vpop.f32.mrf.mxu0 }
 0x14a   :  { %v510_v19 = vadd.f32 %v509_v18, %v496_v17  ;;  %v498_v22 = vadd.f32 %v798_v16, %v497_v21 }
 0x14c   :  { %v514_v20 = vmax.f32 %v510_v19, 0.0 }
 0x14e   :  { %516 = vst [vmem:[#allocation10] sm:$0xff] %v514_v20 }
 0x151   :  { %v511_v23 = vpop.f32.mrf.mxu1 }
 0x152   :  { %v512_v24 = vadd.f32 %v511_v23, %v498_v22 }
 0x154   :  { %v515_v25 = vmax.f32 %v512_v24, 0.0 }
 0x156   :  { %517 = vst [vmem:[#allocation10 + $0x8] sm:$0xff] %v515_v25 }
 0x157   :  { %530 = dma.vmem_to_hbm [thread:$0]  %s523_s16, 256, %s525_s19, [#allocation4], %s928_s26, %s928_s26, %s929_s27  }
 0x158   :  { %925 = dma.done.wait [#allocation4], 256  }
 0x159   :  { %926 = vsyncadd [#allocation4], 4294967040 }
 0x15a   :  { %535 = vsyncpa [#allocation3], 1 }
 0x15b   :  { %536 = vsyncpa [#allocation6], 1 }
 0x15c   :  { %537 = vsyncpa [#allocation9], 1 }
 0x15d   :  { %538 = vsyncpa [#allocation4], 1 }

// kernel: tpu_custom_call.1
= control target key start
LH: loop header
LB: loop body
LE: loop exit
PB: predicated region body
PF: predicated region fallthrough
CT: control target
= control target key end

     0   :  { %10 = vsyncpa [#allocation3], 0  ;;  %s993_s0 = inlined_call_operand.hbm [shape: bf16[16,256], index: 0, kind: input, shape index: {}]   ;;  %s994_s1 = inlined_call_operand.hbm [shape: bf16[256,256], index: 1, kind: input, shape index: {}]   ;;  %s995_s2 = inlined_call_operand.hbm [shape: f32[1,256], index: 2, kind: input, shape index: {}]   ;;  %s996_s3 = inlined_call_operand.hbm [shape: bf16[256,128], index: 3, kind: input, shape index: {}]   ;;  %s997_s4 = inlined_call_operand.vmem [shape: f32[1,128], index: 4, kind: input, shape index: {}]   ;;  %s998_s5 = inlined_call_operand.hbm [shape: f32[16,128], index: 5, kind: output, shape index: {}]  }
   0x1   :  { %11 = vsyncpa [#allocation6], 0 }
   0x2   :  { %12 = vsyncpa [#allocation9], 0 }
   0x3   :  { %13 = vsyncpa [#allocation4], 0  ;;  %s31_s20 = sshll.u32 %s994_s1, 4  ;;  %s927_s21 = smov [#allocation5]   ;;  %s32_s20 = int_to_ptr.hbm [resolvable:$true] %s31_s20 }
   0x4   :  { %s33_s22 = sshll.u32 %s927_s21, 4  ;;  %s18_s25 = sshll.u32 %s993_s0, 4  ;;  %s34_s22 = int_to_ptr.vmem [resolvable:$true] %s33_s22  ;;  %s19_s25 = int_to_ptr.hbm [resolvable:$true] %s18_s25 }
   0x5   :  { %s928_s26 = smov 128   ;;  %s929_s27 = smov 8  }
   0x6   :  { %39 = dma.hbm_to_vmem [thread:$0]  %s32_s20, 4096, %s34_s22, [#allocation6], %s928_s26, %s928_s26, %s929_s27  }
   0x7   :  { %s930_s28 = smov [#allocation2]   ;;  %s45_s1 = sshll.u32 %s995_s2, 4  ;;  %s46_s1 = int_to_ptr.hbm [resolvable:$true] %s45_s1 }
   0x8   :  { %s20_s29 = sshll.u32 %s930_s28, 4  ;;  %s55_s8 = sshll.u32 %s996_s3, 4  ;;  %s21_s29 = int_to_ptr.vmem [resolvable:$true] %s20_s29  ;;  %s56_s8 = int_to_ptr.hbm [resolvable:$true] %s55_s8 }
   0x9   :  { %26 = dma.hbm_to_vmem [thread:$0]  %s19_s25, 256, %s21_s29, [#allocation3], %s928_s26, %s928_s26, %s929_s27  }
   0xa   :  { %s931_s9 = smov [#allocation7]   ;;  %s932_s11 = smov [#allocation8]  }
   0xb   :  { %s47_s10 = sshll.u32 %s931_s9, 4  ;;  %s57_s12 = sshll.u32 %s932_s11, 4  ;;  %s48_s10 = int_to_ptr.vmem [resolvable:$true] %s47_s10  ;;  %s58_s12 = int_to_ptr.vmem [resolvable:$true] %s57_s12 }
   0xc   :  { %50 = dma.hbm_to_vmem [thread:$0]  %s46_s1, 32, %s48_s10, [#allocation6]  }
   0xd   :  { %s933_s13 = smov 64   ;;  %s934_s2 = smov 4  }
   0xe   :  { %63 = dma.hbm_to_vmem [thread:$0]  %s56_s8, 2048, %s58_s12, [#allocation9], %s933_s13, %s933_s13, %s934_s2  }
   0xf   :  { %919 = dma.done.wait [#allocation3], 256  }
  0x10   :  { %920 = vsyncadd [#allocation3], 4294967040 }
  0x11   :  { %921 = dma.done.wait [#allocation6], 4128  }
  0x12   :  { %922 = vsyncadd [#allocation6], 4294963168 }
  0x13   :  { %923 = dma.done.wait [#allocation9], 2048  }
  0x14   :  { %924 = vsyncadd [#allocation9], 4294965248  ;;  %v605_v0 = vld [vmem:[#allocation5 + $0x70] sm:$0xf]  ;;  %v756_v1 = vld [vmem:[#allocation5 + $0x74] sm:$0xf0] }
  0x15   :  { %v669_v2 = vld [vmem:[#allocation5 + $0xf0] sm:$0xf]  ;;  %v606_v3 = vor.u32 %v756_v1, %v605_v0  ;;  %v772_v4 = vld [vmem:[#allocation5 + $0xf4] sm:$0xf0]  ;;  %v755_v5 = vld [vmem:[#allocation5 + $0x74] sm:$0xf] }
  0x16   :  { %v607_v6 = vld [vmem:[#allocation5 + $0x78] sm:$0xf0]  ;;  %v670_v7 = vor.u32 %v772_v4, %v669_v2  ;;  %v771_v9 = vld [vmem:[#allocation5 + $0xf4] sm:$0xf]  ;;  %v597_v11 = vld [vmem:[#allocation5 + $0x60] sm:$0xf] }
  0x17   :  { %v610_v8 = vor.u32 %v755_v5, %v607_v6  ;;  %v671_v10 = vld [vmem:[#allocation5 + $0xf8] sm:$0xf0]  ;;  %292 = vmatpush.bf16.msra.mxu0 %v606_v3  ;;  %v754_v13 = vld [vmem:[#allocation5 + $0x64] sm:$0xf0]  ;;  %v661_v14 = vld [vmem:[#allocation5 + $0xe0] sm:$0xf] }
  0x18   :  { %v674_v12 = vor.u32 %v771_v9, %v671_v10  ;;  %v770_v15 = vld [vmem:[#allocation5 + $0xe4] sm:$0xf0]  ;;  %306 = vmatpush.bf16.msra.mxu1 %v670_v7  ;;  %v598_v16 = vor.u32 %v754_v13, %v597_v11  ;;  %v753_v18 = vld [vmem:[#allocation5 + $0x64] sm:$0xf]  ;;  %v599_v19 = vld [vmem:[#allocation5 + $0x68] sm:$0xf0] }
  0x19   :  { %320 = vmatpush.bf16.msra.mxu2 %v610_v8  ;;  %v662_v17 = vor.u32 %v770_v15, %v661_v14  ;;  %v769_v20 = vld [vmem:[#allocation5 + $0xe4] sm:$0xf]  ;;  %v602_v21 = vor.u32 %v753_v18, %v599_v19  ;;  %v663_v22 = vld [vmem:[#allocation5 + $0xe8] sm:$0xf0]  ;;  %v589_v23 = vld [vmem:[#allocation5 + $0x50] sm:$0xf] }
  0x1a   :  { %334 = vmatpush.bf16.msra.mxu3 %v674_v12  ;;  %v752_v24 = vld [vmem:[#allocation5 + $0x54] sm:$0xf0]  ;;  %v666_v25 = vor.u32 %v769_v20, %v663_v22  ;;  %v653_v26 = vld [vmem:[#allocation5 + $0xd0] sm:$0xf]  ;;  %v751_v28 = vld [vmem:[#allocation5 + $0x54] sm:$0xf] }
  0x1b   :  { %v768_v27 = vld [vmem:[#allocation5 + $0xd4] sm:$0xf0]  ;;  %293 = vmatpush.bf16.msra.mxu0 %v598_v16  ;;  %v590_v29 = vor.u32 %v752_v24, %v589_v23  ;;  %v591_v30 = vld [vmem:[#allocation5 + $0x58] sm:$0xf0]  ;;  %v767_v31 = vld [vmem:[#allocation5 + $0xd4] sm:$0xf] }
  0x1c   :  { %v655_v32 = vld [vmem:[#allocation5 + $0xd8] sm:$0xf0]  ;;  %307 = vmatpush.bf16.msra.mxu1 %v662_v17  ;;  %v654_v33 = vor.u32 %v768_v27, %v653_v26  ;;  %v594_v34 = vor.u32 %v751_v28, %v591_v30  ;;  %v581_v35 = vld [vmem:[#allocation5 + $0x40] sm:$0xf]  ;;  %v750_v36 = vld [vmem:[#allocation5 + $0x44] sm:$0xf0] }
  0x1d   :  { %321 = vmatpush.bf16.msra.mxu2 %v602_v21  ;;  %v645_v37 = vld [vmem:[#allocation5 + $0xc0] sm:$0xf]  ;;  %v658_v38 = vor.u32 %v767_v31, %v655_v32  ;;  %v766_v39 = vld [vmem:[#allocation5 + $0xc4] sm:$0xf0]  ;;  %v749_v40 = vld [vmem:[#allocation5 + $0x44] sm:$0xf]  ;;  %v582_v44 = vor.u32 %v750_v36, %v581_v35 }
  0x1e   :  { %335 = vmatpush.bf16.msra.mxu3 %v666_v25  ;;  %v583_v41 = vld [vmem:[#allocation5 + $0x48] sm:$0xf0]  ;;  %v765_v42 = vld [vmem:[#allocation5 + $0xc4] sm:$0xf]  ;;  %v646_v45 = vor.u32 %v766_v39, %v645_v37  ;;  %v573_v47 = vld [vmem:[#allocation5 + $0x30] sm:$0xf] }
  0x1f   :  { %v647_v43 = vld [vmem:[#allocation5 + $0xc8] sm:$0xf0]  ;;  %294 = vmatpush.bf16.msra.mxu0 %v590_v29  ;;  %v586_v46 = vor.u32 %v749_v40, %v583_v41  ;;  %v748_v48 = vld [vmem:[#allocation5 + $0x34] sm:$0xf0]  ;;  %v637_v49 = vld [vmem:[#allocation5 + $0xb0] sm:$0xf] }
  0x20   :  { %308 = vmatpush.bf16.msra.mxu1 %v654_v33  ;;  %v650_v50 = vor.u32 %v765_v42, %v647_v43  ;;  %v764_v51 = vld [vmem:[#allocation5 + $0xb4] sm:$0xf0]  ;;  %v747_v52 = vld [vmem:[#allocation5 + $0x34] sm:$0xf]  ;;  %v575_v53 = vld [vmem:[#allocation5 + $0x38] sm:$0xf0]  ;;  %v574_v56 = vor.u32 %v748_v48, %v573_v47 }
  0x21   :  { %322 = vmatpush.bf16.msra.mxu2 %v594_v34  ;;  %v763_v54 = vld [vmem:[#allocation5 + $0xb4] sm:$0xf]  ;;  %v639_v55 = vld [vmem:[#allocation5 + $0xb8] sm:$0xf0]  ;;  %v638_v57 = vor.u32 %v764_v51, %v637_v49  ;;  %v578_v58 = vor.u32 %v747_v52, %v575_v53  ;;  %v565_v59 = vld [vmem:[#allocation5 + $0x20] sm:$0xf] }
  0x22   :  { %336 = vmatpush.bf16.msra.mxu3 %v658_v38  ;;  %v746_v60 = vld [vmem:[#allocation5 + $0x24] sm:$0xf0]  ;;  %v629_v61 = vld [vmem:[#allocation5 + $0xa0] sm:$0xf]  ;;  %v642_v62 = vor.u32 %v763_v54, %v639_v55  ;;  %v745_v0 = vld [vmem:[#allocation5 + $0x24] sm:$0xf] }
  0x23   :  { %295 = vmatpush.bf16.msra.mxu0 %v582_v44  ;;  %v762_v63 = vld [vmem:[#allocation5 + $0xa4] sm:$0xf0]  ;;  %v567_v1 = vld [vmem:[#allocation5 + $0x28] sm:$0xf0]  ;;  %v761_v2 = vld [vmem:[#allocation5 + $0xa4] sm:$0xf]  ;;  %v566_v4 = vor.u32 %v746_v60, %v565_v59 }
  0x24   :  { %309 = vmatpush.bf16.msra.mxu1 %v646_v45  ;;  %v631_v3 = vld [vmem:[#allocation5 + $0xa8] sm:$0xf0]  ;;  %v630_v5 = vor.u32 %v762_v63, %v629_v61  ;;  %v570_v6 = vor.u32 %v745_v0, %v567_v1  ;;  %v557_v7 = vld [vmem:[#allocation5 + $0x10] sm:$0xf]  ;;  %v744_v8 = vld [vmem:[#allocation5 + $0x14] sm:$0xf0] }
  0x25   :  { %323 = vmatpush.bf16.msra.mxu2 %v586_v46  ;;  %v621_v9 = vld [vmem:[#allocation5 + $0x90] sm:$0xf]  ;;  %v634_v10 = vor.u32 %v761_v2, %v631_v3  ;;  %v760_v11 = vld [vmem:[#allocation5 + $0x94] sm:$0xf0]  ;;  %v743_v12 = vld [vmem:[#allocation5 + $0x14] sm:$0xf]  ;;  %v558_v16 = vor.u32 %v744_v8, %v557_v7 }
  0x26   :  { %337 = vmatpush.bf16.msra.mxu3 %v650_v50  ;;  %v559_v13 = vld [vmem:[#allocation5 + $0x18] sm:$0xf0]  ;;  %v759_v14 = vld [vmem:[#allocation5 + $0x94] sm:$0xf]  ;;  %v549_v17 = vld [vmem:[#allocation5] sm:$0xf]  ;;  %v622_v18 = vor.u32 %v760_v11, %v621_v9 }
  0x27   :  { %296 = vmatpush.bf16.msra.mxu0 %v574_v56  ;;  %v623_v15 = vld [vmem:[#allocation5 + $0x98] sm:$0xf0]  ;;  %v562_v19 = vor.u32 %v743_v12, %v559_v13  ;;  %v742_v20 = vld [vmem:[#allocation5 + $0x4] sm:$0xf0]  ;;  %v613_v21 = vld [vmem:[#allocation5 + $0x80] sm:$0xf] }
  0x28   :  { %310 = vmatpush.bf16.msra.mxu1 %v638_v57  ;;  %v758_v22 = vld [vmem:[#allocation5 + $0x84] sm:$0xf0]  ;;  %v626_v23 = vor.u32 %v759_v14, %v623_v15  ;;  %v741_v24 = vld [vmem:[#allocation5 + $0x4] sm:$0xf]  ;;  %v551_v25 = vld [vmem:[#allocation5 + $0x8] sm:$0xf0]  ;;  %v550_v28 = vor.u32 %v742_v20, %v549_v17 }
  0x29   :  { %324 = vmatpush.bf16.msra.mxu2 %v578_v58  ;;  %v757_v26 = vld [vmem:[#allocation5 + $0x84] sm:$0xf]  ;;  %v615_v27 = vld [vmem:[#allocation5 + $0x88] sm:$0xf0]  ;;  %v541_v29 = vld [vmem:[#allocation2] sm:$0xf]  ;;  %v614_v31 = vor.u32 %v758_v22, %v613_v21  ;;  %v554_v32 = vor.u32 %v741_v24, %v551_v25 }
  0x2a   :  { %338 = vmatpush.bf16.msra.mxu3 %v642_v62  ;;  %v740_v30 = vld [vmem:[#allocation2 + $0x4] sm:$0xf0]  ;;  %v739_v33 = vld [vmem:[#allocation2 + $0x4] sm:$0xf]  ;;  %v543_v34 = vld [vmem:[#allocation2 + $0x8] sm:$0xf0]  ;;  %v618_v35 = vor.u32 %v757_v26, %v615_v27 }
  0x2b   :  { %297 = vmatpush.bf16.msra.mxu0 %v566_v4  ;;  %v780_v36 = vld [vmem:[#allocation8 + $0x38] sm:$0xff]  ;;  %v542_v37 = vor.u32 %v740_v30, %v541_v29  ;;  %v546_v39 = vor.u32 %v739_v33, %v543_v34  ;;  %v779_v40 = vld [vmem:[#allocation8 + $0x30] sm:$0xff]  ;;  %v778_v42 = vld [vmem:[#allocation8 + $0x28] sm:$0xff]  ;;  %s935_s15 = smov [#allocation10]   ;;  %s524_s19 = sshll.u32 %s998_s5, 4  ;;  %s525_s19 = int_to_ptr.hbm [resolvable:$true] %s524_s19 }
  0x2c   :  { %311 = vmatpush.bf16.msra.mxu1 %v630_v5  ;;  %v788_v38 = vld [vmem:[#allocation8 + $0x78] sm:$0xff]  ;;  %v787_v41 = vld [vmem:[#allocation8 + $0x70] sm:$0xff]  ;;  %v777_v43 = vld [vmem:[#allocation8 + $0x20] sm:$0xff]  ;;  %s522_s16 = sshll.u32 %s935_s15, 4  ;;  %s523_s16 = int_to_ptr.vmem [resolvable:$true] %s522_s16 }
  0x2d   :  { %325 = vmatpush.bf16.msra.mxu2 %v570_v6  ;;  %v786_v44 = vld [vmem:[#allocation8 + $0x68] sm:$0xff]  ;;  %v776_v45 = vld [vmem:[#allocation8 + $0x18] sm:$0xff]  ;;  %v785_v46 = vld [vmem:[#allocation8 + $0x60] sm:$0xff] }
  0x2e   :  { %339 = vmatpush.bf16.msra.mxu3 %v634_v10  ;;  %v775_v47 = vld [vmem:[#allocation8 + $0x10] sm:$0xff]  ;;  %v784_v48 = vld [vmem:[#allocation8 + $0x58] sm:$0xff]  ;;  %v774_v49 = vld [vmem:[#allocation8 + $0x8] sm:$0xff] }
  0x2f   :  { %298 = vmatpush.bf16.msra.mxu0 %v558_v16  ;;  %v783_v50 = vld [vmem:[#allocation8 + $0x50] sm:$0xff]  ;;  %v773_v51 = vld [vmem:[#allocation8] sm:$0xff]  ;;  %v782_v52 = vld [vmem:[#allocation8 + $0x48] sm:$0xff] }
  0x30   :  { %312 = vmatpush.bf16.msra.mxu1 %v622_v18  ;;  %v781_v53 = vld [vmem:[#allocation8 + $0x40] sm:$0xff]  ;;  %v116_v54 = vld [vmem:[#allocation7] sm:$0x3]  ;;  %v798_v16 = vld [vmem:[%s997_s4] ss:$0 sm:$0xff] }
  0x31   :  { %326 = vmatpush.bf16.msra.mxu2 %v562_v19  ;;  %v118_v56 = vperm.slane %v116_v54, 0  ;;  %v119_v60 = vperm.slane %v116_v54, 1 }
  0x32   :  { %340 = vmatpush.bf16.msra.mxu3 %v626_v23 }
  0x33   :  { %299 = vmatpush.bf16.msra.mxu0 %v550_v28 }
  0x34   :  { %313 = vmatpush.bf16.msra.mxu1 %v614_v31 }
  0x35   :  { %327 = vmatpush.bf16.msra.mxu2 %v554_v32 }
  0x36   :  { %341 = vmatpush.bf16.msra.mxu3 %v618_v35  ;;  %300 = vmatmul.bf16.vlgmr.msra.gmra.mxu0 %v542_v37 }
  0x37   :  { %486 = vmatpush.bf16.msrb.mxu0 %v780_v36  ;;  %314 = vmatmul.bf16.vlgmr.msra.gmra.mxu1 %v546_v39 }
  0x38   :  { %500 = vmatpush.bf16.msrb.mxu1 %v788_v38  ;;  %328 = vmatmul.bf16.vlgmr.msra.gmra.mxu2 %v542_v37 }
  0x39   :  { %342 = vmatmul.bf16.vlgmr.msra.gmra.mxu3 %v546_v39 }
  0x3b   :  { %487 = vmatpush.bf16.msrb.mxu0 %v779_v40 }
  0x3c   :  { %501 = vmatpush.bf16.msrb.mxu1 %v787_v41 }
  0x3f   :  { %488 = vmatpush.bf16.msrb.mxu0 %v778_v42 }
  0x40   :  { %502 = vmatpush.bf16.msrb.mxu1 %v786_v44 }
  0x43   :  { %489 = vmatpush.bf16.msrb.mxu0 %v777_v43 }
  0x44   :  { %503 = vmatpush.bf16.msrb.mxu1 %v785_v46 }
  0x47   :  { %490 = vmatpush.bf16.msrb.mxu0 %v776_v45 }
  0x48   :  { %504 = vmatpush.bf16.msrb.mxu1 %v784_v48 }
  0x4b   :  { %491 = vmatpush.bf16.msrb.mxu0 %v775_v47 }
  0x4c   :  { %505 = vmatpush.bf16.msrb.mxu1 %v783_v50 }
  0x4f   :  { %492 = vmatpush.bf16.msrb.mxu0 %v774_v49 }
  0x50   :  { %506 = vmatpush.bf16.msrb.mxu1 %v782_v52 }
  0x53   :  { %493 = vmatpush.bf16.msrb.mxu0 %v773_v51 }
  0x54   :  { %507 = vmatpush.bf16.msrb.mxu1 %v781_v53 }
  0xb3   :  { %v301_v55 = vpop.f32.mrf.mxu0 }
  0xb4   :  { %v315_v57 = vpop.f32.mrf.mxu1  ;;  %v302_v58 = vadd.f32 %v301_v55, %v118_v56 }
  0xb6   :  { %v316_v63 = vadd.f32 %v315_v57, %v302_v58 }
  0xb8   :  { %v348_v4 = vmax.f32 %v316_v63, 0.0 }
  0xbb   :  { %v329_v59 = vpop.f32.mrf.mxu2  ;;  %v303_v62 = vpop.f32.mrf.mxu0 }
  0xbc   :  { %v343_v61 = vpop.f32.mrf.mxu3  ;;  %v304_v0 = vadd.f32 %v303_v62, %v118_v56  ;;  %v317_v1 = vpop.f32.mrf.mxu1  ;;  %v330_v3 = vadd.f32 %v329_v59, %v119_v60 }
  0xbe   :  { %v318_v2 = vadd.f32 %v317_v1, %v304_v0  ;;  %v344_v8 = vadd.f32 %v343_v61, %v330_v3 }
  0xc0   :  { %v350_v5 = vmax.f32 %v318_v2, 0.0  ;;  %v349_v12 = vmax.f32 %v344_v8, 0.0 }
  0xc2   :  { %v352_v6 = vpack.c.bf16 %v350_v5, %v348_v4 }
  0xc3   :  { %v331_v7 = vpop.f32.mrf.mxu2 }
  0xc4   :  { %v332_v9 = vadd.f32 %v331_v7, %v119_v60  ;;  %v345_v10 = vpop.f32.mrf.mxu3  ;;  %494 = vmatmul.bf16.vlgmr.msrb.gmra.mxu0 %v352_v6 }
  0xc6   :  { %v346_v11 = vadd.f32 %v345_v10, %v332_v9 }
  0xc8   :  { %v351_v13 = vmax.f32 %v346_v11, 0.0 }
  0xca   :  { %v353_v14 = vpack.c.bf16 %v351_v13, %v349_v12 }
  0xcc   :  { %508 = vmatmul.bf16.vlgmr.msrb.gmra.mxu1 %v353_v14 }
 0x141   :  { %v495_v15 = vpop.f32.mrf.mxu0 }
 0x142   :  { %v496_v17 = vadd.f32 %v798_v16, %v495_v15 }
 0x149   :  { %v509_v18 = vpop.f32.mrf.mxu1  ;;  %v497_v21 = vpop.f32.mrf.mxu0 }
 0x14a   :  { %v510_v19 = vadd.f32 %v509_v18, %v496_v17  ;;  %v498_v22 = vadd.f32 %v798_v16, %v497_v21 }
 0x14c   :  { %v514_v20 = vmax.f32 %v510_v19, 0.0 }
 0x14e   :  { %516 = vst [vmem:[#allocation10] sm:$0xff] %v514_v20 }
 0x151   :  { %v511_v23 = vpop.f32.mrf.mxu1 }
 0x152   :  { %v512_v24 = vadd.f32 %v511_v23, %v498_v22 }
 0x154   :  { %v515_v25 = vmax.f32 %v512_v24, 0.0 }
 0x156   :  { %517 = vst [vmem:[#allocation10 + $0x8] sm:$0xff] %v515_v25 }
 0x157   :  { %530 = dma.vmem_to_hbm [thread:$0]  %s523_s16, 256, %s525_s19, [#allocation4], %s928_s26, %s928_s26, %s929_s27  }
 0x158   :  { %925 = dma.done.wait [#allocation4], 256  }
 0x159   :  { %926 = vsyncadd [#allocation4], 4294967040 }
 0x15a   :  { %535 = vsyncpa [#allocation3], 1 }
 0x15b   :  { %536 = vsyncpa [#allocation6], 1 }
 0x15c   :  { %537 = vsyncpa [#allocation9], 1 }
 0x15d   :  { %538 = vsyncpa [#allocation4], 1 }

</bundles_post_ra>
